<compile_context>
chip_gen: v6e
topology: v6e:2x2x1
jax: 0.10.0
libtpu: 0.0.40
codegen_flags: <defaults>
</compile_context>

<pallas_src>
import math
import functools

import jax
import jax.numpy as jnp
from jax.experimental import pallas as pl
from jax.experimental.pallas import tpu as pltpu


D_MODEL = 512  # module spec

_SMALL_PROBLEM_BYTES = 1 << 20        # single block below this (per-step overhead dominates)
_XLA_FALLBACK_TILE_BYTES = 64 << 10   # multi-step tiles this small -> just let XLA fuse the add
_TARGET_TILE_BYTES = 4 << 20          # ~roofline sweet spot for the x tile


# ---------------------------------------------------------------------------
# Setup (the PyTorch "registered buffer"): built ONCE, outside the hot path.
# ---------------------------------------------------------------------------
def make_pe_table(d_model: int, max_len: int = 5000,
                  dtype=jnp.float32) -> jnp.ndarray:
    """Sinusoidal table, shape [max_len, 1, d_model], matching the PyTorch
    buffer layout (pe.unsqueeze(0).transpose(0, 1)).  Pre-cast here (like a
    registered buffer) so the forward never re-casts the whole table."""
    position = jnp.arange(0, max_len, dtype=jnp.float32)[:, None]            # [L, 1]
    div_term = jnp.exp(jnp.arange(0, d_model, 2, dtype=jnp.float32)
                       * (-math.log(10000.0) / d_model))                      # [D/2]
    pe = jnp.zeros((max_len, d_model), dtype=jnp.float32)
    pe = pe.at[:, 0::2].set(jnp.sin(position * div_term))
    pe = pe.at[:, 1::2].set(jnp.cos(position * div_term))
    return pe[:, None, :].astype(dtype)                                       # [L, 1, D]


# ---------------------------------------------------------------------------
# Kernels
# ---------------------------------------------------------------------------
def _pe_add_2d_kernel(x_ref, pe_ref, o_ref, *, batch: int):
    # x_ref/o_ref: (tile_s, B*D)  lane-dense, fully packed vregs.
    # pe_ref     : (tile_s, D)    one copy; replicate across batch on the XLU.
    pe = pe_ref[...]
    if batch > 1:
        pe = jnp.tile(pe, (1, batch))
    o_ref[...] = x_ref[...] + pe


def _pe_add_3d_kernel(x_ref, pe_ref, o_ref):
    # x_ref/o_ref: (tile_s, B, D)   pe_ref: (tile_s, 1, D)  (B >= 8: already dense)
    o_ref[...] = x_ref[...] + pe_ref[...]


# ---------------------------------------------------------------------------
# Tiling helpers
# ---------------------------------------------------------------------------
def _vmem_footprint_budget() -> int:
    """Per-generation cap on the double-buffered (x + out + pe) footprint."""
    try:
        cap = pltpu.get_tpu_info().vmem_capacity_bytes
    except Exception:
        cap = 64 << 20  # conservative (v7x) if the query is unavailable
    return min(24 << 20, cap // 4)


def _largest_divisor_leq(n: int, limit: int, align: int) -> int:
    """Largest divisor of n that is <= limit and (multiple of `align` or == n).
    Returns 0 if none qualifies."""
    best = 0
    d = 1
    while d * d <= n:
        if n % d == 0:
            for c in (d, n // d):
                if c <= limit and (align <= 1 or c % align == 0 or c == n):
                    if c > best:
                        best = c
        d += 1
    return best


def _choose_tile_s(S: int, B: int, row_bytes: int, total_bytes: int,
                   align: int) -> int:
    """Pick tile_s (a divisor of S).  0 means 'no clean tiling, use XLA'."""
    if total_bytes <= _SMALL_PROBLEM_BYTES:
        return S                                   # one block, no pipeline overhead
    budget = _vmem_footprint_budget()
    factor = 2.0 * (2.0 + 1.0 / B)                 # 2 bufs x (x tile + out tile + pe tile)
    max_tile_bytes = min(_TARGET_TILE_BYTES, int(budget / factor))
    max_rows = max(1, max_tile_bytes // row_bytes)
    # Megacore split (only pays off on v7x): only force >=2 grid steps when each
    # step still carries >= ~2 MiB of work.
    if total_bytes >= (4 << 20):
        max_rows = min(max_rows, max(1, S // 2))
    tile = _largest_divisor_leq(S, max_rows, align)
    if tile == 0:
        # No aligned divisor under the cap: take one full block if it still fits
        # the footprint budget, otherwise signal the XLA fallback.
        if S * row_bytes * factor <= budget:
            return S
        return 0
    return tile


def _compiler_params(footprint_bytes: int) -> pltpu.CompilerParams:
    kwargs = dict(dimension_semantics=("parallel",))
    # v5e's scoped-VMEM default is 16 MiB; raise it only when the footprint gets
    # close.  32 MiB is safe on every generation (physical: 64 MiB v7x, 128 MiB
    # v5e/v6e) and the footprint budget never exceeds it.
    if footprint_bytes > (12 << 20):
        kwargs["vmem_limit_bytes"] = 32 << 20
    return pltpu.CompilerParams(**kwargs)


# ---------------------------------------------------------------------------
# Forward
# ---------------------------------------------------------------------------
@functools.partial(jax.jit, static_argnames=("donate_x",))
def positional_encoding_forward(x: jnp.ndarray, pe_full: jnp.ndarray,
                                *, donate_x: bool = False) -> jnp.ndarray:
    """x: [S, B, D]; pe_full: [max_len, 1, D].  Returns x + pe_full[:S]."""
    S, B, D = x.shape
    max_len = pe_full.shape[0]
    assert max_len >= S, "max_len must cover the sequence length"

    # Prefer pre-casting at setup (make_pe_table(dtype=...)).  If the buffer is
    # still f32 and x is lower precision, cast only the S rows used this call.
    # NOTE: casting pe before the add differs slightly from PyTorch's f32-add
    # for bf16 activations; keep the buffer f32 if bit-parity matters.
    pe_use = pe_full if pe_full.dtype == x.dtype else pe_full[:S].astype(x.dtype)

    itemsize = x.dtype.itemsize
    row_bytes = B * D * itemsize
    total_bytes = S * row_bytes

    # Small-batch layout fix: present x as lane-dense 2D [S, B*D] so vregs are
    # fully packed (with B=2 the (tile_s,B,D) layout is only 2/8 occupied and
    # the store slot becomes the bottleneck).
    small_batch = B < (8 if itemsize >= 4 else 16)
    sublane_align = {4: 8, 2: 16, 1: 32}.get(itemsize, 8) if small_batch else 1

    tile_s = _choose_tile_s(S, B, row_bytes, total_bytes, sublane_align)
    if tile_s == 0 or (S // max(tile_s, 1) > 1
                       and tile_s * row_bytes < _XLA_FALLBACK_TILE_BYTES):
        # No clean tiling (e.g. large prime S) or tiles too small to amortize
        # the per-step pipeline cost: let XLA emit the fused broadcast-add.
        return x + pe_use[:S]

    num_tiles = S // tile_s                        # tile_s always divides S
    tile_x_bytes = tile_s * row_bytes
    tile_pe_bytes = tile_s * D * itemsize
    footprint = 2 * (2 * tile_x_bytes + tile_pe_bytes)
    cparams = _compiler_params(footprint)
    io_aliases = {0: 0} if donate_x else {}

    if small_batch:
        x2 = x.reshape(S, B * D)                   # free contiguous reshape
        pe2 = pe_use.reshape(pe_use.shape[0], D)
        out = pl.pallas_call(
            functools.partial(_pe_add_2d_kernel, batch=B),
            out_shape=jax.ShapeDtypeStruct((S, B * D), x.dtype),
            grid=(num_tiles,),
            in_specs=[
                pl.BlockSpec((tile_s, B * D), lambda i: (i, 0)),
                pl.BlockSpec((tile_s, D), lambda i: (i, 0)),
            ],
            out_specs=pl.BlockSpec((tile_s, B * D), lambda i: (i, 0)),
            input_output_aliases=io_aliases,
            compiler_params=cparams,
        )(x2, pe2)
        return out.reshape(S, B, D)

    out = pl.pallas_call(
        _pe_add_3d_kernel,
        out_shape=jax.ShapeDtypeStruct((S, B, D), x.dtype),
        grid=(num_tiles,),
        in_specs=[
            pl.BlockSpec((tile_s, B, D), lambda i: (i, 0, 0)),
            pl.BlockSpec((tile_s, 1, D), lambda i: (i, 0, 0)),
        ],
        out_specs=pl.BlockSpec((tile_s, B, D), lambda i: (i, 0, 0)),
        input_output_aliases=io_aliases,
        compiler_params=cparams,
    )(x, pe_use)
    return out


if __name__ == "__main__":
    # Small shapes consistent with the module: x is [seq, batch, d_model],
    # d_model = 512 per the spec (keeps the last dim lane-dense).
    seq_len, batch, max_len = 16, 2, 128

    key = jax.random.PRNGKey(0)
    x = jax.random.normal(key, (seq_len, batch, D_MODEL), dtype=jnp.float32)

    pe_full = make_pe_table(D_MODEL, max_len)      # f32 buffer, like the registered buffer

    out = positional_encoding_forward(x, pe_full)
    out = jax.block_until_ready(out)

    # Pure-JAX reference check.
    ref = x + pe_full[:seq_len]
    assert out.shape == (seq_len, batch, D_MODEL)
    assert out.dtype == x.dtype
    assert jnp.allclose(out, ref, atol=1e-6, rtol=1e-6)

    print("KERNEL_OK")
</pallas_src>

<mosaic_0001>
module attributes {stable_mosaic.version = 11 : i64} {
  func.func @_pe_add_2d_kernel(%arg0: i32, %arg1: memref<16x1024xf32, #tpu.memory_space<vmem>>, %arg2: memref<16x512xf32, #tpu.memory_space<vmem>>, %arg3: memref<16x1024xf32, #tpu.memory_space<vmem>>) attributes {dimension_semantics = [#tpu.dimension_semantics<parallel>], iteration_bounds = array<i64: 1>, scalar_prefetch = 0 : i64, scratch_operands = 0 : i64, tpu.core_type = #tpu.core_type<tc>, window_params = [{transform_indices = @transform_0, window_bounds = array<i64: 16, 1024>}, {transform_indices = @transform_1, window_bounds = array<i64: 16, 512>}, {transform_indices = @transform_2, window_bounds = array<i64: 16, 1024>}]} {
    %c0 = arith.constant 0 : index
    %c0_0 = arith.constant 0 : index
    %0 = vector.load %arg2[%c0, %c0_0] : memref<16x512xf32, #tpu.memory_space<vmem>>, vector<16x512xf32>
    %1 = tpu.concatenate %0, %0 in 1 : vector<16x512xf32>, vector<16x512xf32> -> vector<16x1024xf32>
    %c0_1 = arith.constant 0 : index
    %c0_2 = arith.constant 0 : index
    %2 = vector.load %arg1[%c0_1, %c0_2] : memref<16x1024xf32, #tpu.memory_space<vmem>>, vector<16x1024xf32>
    %3 = arith.addf %2, %1 : vector<16x1024xf32>
    %c0_3 = arith.constant 0 : index
    %c0_4 = arith.constant 0 : index
    %4 = vector.load %arg3[%c0_3, %c0_4] : memref<16x1024xf32, #tpu.memory_space<vmem>>, vector<16x1024xf32>
    tpu.vector_store %arg3[%c0_3, %c0_4], %3 {strides = array<i32>} : memref<16x1024xf32, #tpu.memory_space<vmem>>, vector<16x1024xf32>,
    return
  }
  func.func @transform_0(%arg0: i32) -> (i32, i32) {
    %c0_i32 = arith.constant 0 : i32
    %c0_i32_0 = arith.constant 0 : i32
    return %arg0, %c0_i32 : i32, i32
  }
  func.func @transform_1(%arg0: i32) -> (i32, i32) {
    %c0_i32 = arith.constant 0 : i32
    %c0_i32_0 = arith.constant 0 : i32
    return %arg0, %c0_i32 : i32, i32
  }
  func.func @transform_2(%arg0: i32) -> (i32, i32) {
    %c0_i32 = arith.constant 0 : i32
    %c0_i32_0 = arith.constant 0 : i32
    return %arg0, %c0_i32 : i32, i32
  }
}

</mosaic_0001>

<bundles_post_ra>
// kernel: positional_encoding_forward.1
= control target key start
LH: loop header
LB: loop body
LE: loop exit
PB: predicated region body
PF: predicated region fallthrough
CT: control target
= control target key end

     0   :  { %s206_s0 = inlined_call_operand.vmem [shape: f32[16,1024], index: 0, kind: input, shape index: {}]   ;;  %s207_s1 = inlined_call_operand.vmem [shape: f32[128,512], index: 1, kind: input, shape index: {}]   ;;  %s208_s2 = inlined_call_operand.vmem [shape: f32[16,1024], index: 2, kind: output, shape index: {}]  }
   0x1   :  { %v11_v0 = vld [vmem:[%s207_s1] sm:$0xff]  ;;  %v12_v2 = vld [vmem:[%s207_s1 + $0x8] sm:$0xff]  ;;  %v13_v5 = vld [vmem:[%s207_s1 + $0x10] sm:$0xff] }
   0x2   :  { %v19_v1 = vld [vmem:[%s206_s0] sm:$0xff]  ;;  %v20_v4 = vld [vmem:[%s206_s0 + $0x8] sm:$0xff]  ;;  %v21_v6 = vld [vmem:[%s206_s0 + $0x10] sm:$0xff] }
   0x3   :  { %v35_v3 = vadd.f32 %v19_v1, %v11_v0  ;;  %v36_v7 = vadd.f32 %v20_v4, %v12_v2  ;;  %v37_v8 = vadd.f32 %v21_v6, %v13_v5  ;;  %v14_v9 = vld [vmem:[%s207_s1 + $0x18] sm:$0xff]  ;;  %v23_v11 = vld [vmem:[%s206_s0 + $0x20] sm:$0xff]  ;;  %v24_v14 = vld [vmem:[%s206_s0 + $0x28] sm:$0xff] }
   0x4   :  { %v22_v10 = vld [vmem:[%s206_s0 + $0x18] sm:$0xff]  ;;  %v39_v13 = vadd.f32 %v23_v11, %v11_v0  ;;  %v25_v15 = vld [vmem:[%s206_s0 + $0x30] sm:$0xff]  ;;  %v40_v17 = vadd.f32 %v24_v14, %v12_v2  ;;  %v15_v20 = vld [vmem:[%s207_s1 + $0x20] sm:$0xff] }
   0x5   :  { %51 = vst [vmem:[%s208_s2] sm:$0xff] %v35_v3  ;;  %v38_v12 = vadd.f32 %v22_v10, %v14_v9  ;;  %v26_v16 = vld [vmem:[%s206_s0 + $0x38] sm:$0xff]  ;;  %52 = vst [vmem:[%s208_s2 + $0x8] sm:$0xff] %v36_v7  ;;  %v41_v18 = vadd.f32 %v25_v15, %v13_v5  ;;  %v27_v21 = vld [vmem:[%s206_s0 + $0x40] sm:$0xff] }
   0x6   :  { %53 = vst [vmem:[%s208_s2 + $0x10] sm:$0xff] %v37_v8  ;;  %v42_v19 = vadd.f32 %v26_v16, %v14_v9  ;;  %v16_v22 = vld [vmem:[%s207_s1 + $0x28] sm:$0xff]  ;;  %55 = vst [vmem:[%s208_s2 + $0x20] sm:$0xff] %v39_v13  ;;  %v43_v23 = vadd.f32 %v27_v21, %v15_v20  ;;  %v17_v25 = vld [vmem:[%s207_s1 + $0x30] sm:$0xff] }
   0x7   :  { %54 = vst [vmem:[%s208_s2 + $0x18] sm:$0xff] %v38_v12  ;;  %v28_v24 = vld [vmem:[%s206_s0 + $0x48] sm:$0xff]  ;;  %v29_v26 = vld [vmem:[%s206_s0 + $0x50] sm:$0xff]  ;;  %56 = vst [vmem:[%s208_s2 + $0x28] sm:$0xff] %v40_v17 }
   0x8   :  { %57 = vst [vmem:[%s208_s2 + $0x30] sm:$0xff] %v41_v18  ;;  %58 = vst [vmem:[%s208_s2 + $0x38] sm:$0xff] %v42_v19  ;;  %v44_v27 = vadd.f32 %v28_v24, %v16_v22  ;;  %v45_v28 = vadd.f32 %v29_v26, %v17_v25  ;;  %v18_v29 = vld [vmem:[%s207_s1 + $0x38] sm:$0xff]  ;;  %v31_v31 = vld [vmem:[%s206_s0 + $0x60] sm:$0xff] }
   0x9   :  { %v30_v30 = vld [vmem:[%s206_s0 + $0x58] sm:$0xff]  ;;  %59 = vst [vmem:[%s208_s2 + $0x40] sm:$0xff] %v43_v23  ;;  %v47_v33 = vadd.f32 %v31_v31, %v15_v20  ;;  %v32_v34 = vld [vmem:[%s206_s0 + $0x68] sm:$0xff]  ;;  %v33_v35 = vld [vmem:[%s206_s0 + $0x70] sm:$0xff] }
   0xa   :  { %v46_v32 = vadd.f32 %v30_v30, %v18_v29  ;;  %v34_v36 = vld [vmem:[%s206_s0 + $0x78] sm:$0xff]  ;;  %60 = vst [vmem:[%s208_s2 + $0x48] sm:$0xff] %v44_v27  ;;  %61 = vst [vmem:[%s208_s2 + $0x50] sm:$0xff] %v45_v28  ;;  %v48_v37 = vadd.f32 %v32_v34, %v16_v22  ;;  %v49_v38 = vadd.f32 %v33_v35, %v17_v25 }
   0xb   :  { %v50_v39 = vadd.f32 %v34_v36, %v18_v29  ;;  %63 = vst [vmem:[%s208_s2 + $0x60] sm:$0xff] %v47_v33 }
   0xc   :  { %62 = vst [vmem:[%s208_s2 + $0x58] sm:$0xff] %v46_v32  ;;  %64 = vst [vmem:[%s208_s2 + $0x68] sm:$0xff] %v48_v37 }
   0xd   :  { %65 = vst [vmem:[%s208_s2 + $0x70] sm:$0xff] %v49_v38  ;;  %66 = vst [vmem:[%s208_s2 + $0x78] sm:$0xff] %v50_v39 }

</bundles_post_ra>
